<compile_context>
chip_gen: v5e
topology: v5e:2x2
jax: 0.10.0
libtpu: 0.0.40
codegen_flags: <defaults>
</compile_context>

<pallas_src>
import numpy as np
import jax
import jax.numpy as jnp
from jax.experimental import pallas as pl
from jax.experimental.pallas import tpu as pltpu


def _decoder_kernel(z_ref, w1_ref, b1_ref, w2_ref, b2_ref, out_ref):
    # Layer 1: MXU matmul (bf16 operands, f32 accumulate) + bias + ReLU (f32 on VPU).
    h = jnp.dot(z_ref[...], w1_ref[...], preferred_element_type=jnp.float32)
    h = jnp.maximum(h + b1_ref[...], 0.0)            # (TB, H) + (1, H) broadcast

    # Layer 2: cast activations to the matmul dtype for the MXU; bias add and
    # sigmoid stay f32 (v5e VPU/EUP have no bf16 path).
    logits = jnp.dot(h.astype(w2_ref.dtype), w2_ref[...],
                     preferred_element_type=jnp.float32)
    out_ref[...] = jax.nn.sigmoid(logits + b2_ref[...]).astype(out_ref.dtype)


def _round_up(x, m):
    return (x + m - 1) // m * m


def decoder_forward(z, w1, b1, w2, b2, image_shape, *, tile_b=1024,
                    matmul_dtype=jnp.bfloat16):
    """z: (B, z_dim); w1: (z_dim, H); b1: (1, H); w2: (H, D); b2: (1, D).

    Weights are stored as (in_features, out_features) (transpose of PyTorch's
    nn.Linear weight), so both layers are plain `x @ W + b` matmuls on the MXU.
    """
    B, z_dim = z.shape
    H = w1.shape[1]
    D = w2.shape[1]
    assert D == int(np.prod(image_shape))

    # --- pad hidden and output dims to MXU/lane friendly multiples (256) ----
    H_pad = _round_up(H, 256)                         # 400 -> 512
    D_pad = _round_up(D, 256)                         # e.g. 784 -> 1024, 196 -> 256
    if H_pad != H:
        w1 = jnp.pad(w1, ((0, 0), (0, H_pad - H)))    # zero cols -> relu(0+0)=0
        b1 = jnp.pad(b1, ((0, 0), (0, H_pad - H)))
        w2 = jnp.pad(w2, ((0, H_pad - H), (0, 0)))    # zero rows -> contribute 0
    if D_pad != D:
        w2 = jnp.pad(w2, ((0, 0), (0, D_pad - D)))    # padded cols sliced off below
        b2 = jnp.pad(b2, ((0, 0), (0, D_pad - D)))

    # --- bf16 matmul operands, f32 everything elementwise --------------------
    z_mm = z.astype(matmul_dtype)
    w1 = w1.astype(matmul_dtype)
    w2 = w2.astype(matmul_dtype)
    b1 = b1.astype(jnp.float32)
    b2 = b2.astype(jnp.float32)

    # --- tile & pad the batch dimension --------------------------------------
    B_aligned = _round_up(B, 8)
    tile_b = min(tile_b, B_aligned)
    if B_aligned >= 16:
        # Keep >= 2 grid steps when the batch allows it so the "parallel" axis
        # can shard across both v7x TensorCores (harmless on v5e/v6e).
        tile_b = min(tile_b, _round_up((B_aligned + 1) // 2, 8))
    B_pad = _round_up(B, tile_b)
    if B_pad != B:
        z_mm = jnp.pad(z_mm, ((0, B_pad - B), (0, 0)))   # padded rows sliced off below
    grid = (B_pad // tile_b,)

    # --- VMEM budget (explicit limit) and scheduler cost estimate ------------
    in_bytes = jnp.dtype(matmul_dtype).itemsize
    vmem_bytes = (
        2 * tile_b * z_dim * in_bytes            # double-buffered z tile
        + 2 * tile_b * D_pad * 4                 # double-buffered out tile (f32)
        + z_dim * H_pad * in_bytes               # resident, single-buffered weights
        + H_pad * D_pad * in_bytes
        + (H_pad + D_pad) * 4                    # biases (f32)
        + 3 * tile_b * max(H_pad, D_pad) * 4     # in-kernel h / logits temporaries
    )
    vmem_limit = int(min(max(2 * vmem_bytes, 32 * 1024 * 1024), 64 * 1024 * 1024))

    cost = pl.CostEstimate(
        flops=2 * B_pad * (z_dim * H_pad + H_pad * D_pad),
        transcendentals=B_pad * D_pad,                    # sigmoid exp
        bytes_accessed=(B_pad * z_dim * in_bytes + B_pad * D_pad * 4
                        + z_dim * H_pad * in_bytes + H_pad * D_pad * in_bytes
                        + (H_pad + D_pad) * 4),
    )

    resident = pl.Buffered(1)   # constant index_map -> no double-buffering needed

    out = pl.pallas_call(
        _decoder_kernel,
        out_shape=jax.ShapeDtypeStruct((B_pad, D_pad), jnp.float32),
        grid=grid,
        in_specs=[
            pl.BlockSpec((tile_b, z_dim), lambda i: (i, 0)),                       # z tile per step
            pl.BlockSpec((z_dim, H_pad), lambda i: (0, 0), pipeline_mode=resident),  # W1 resident
            pl.BlockSpec((1, H_pad), lambda i: (0, 0), pipeline_mode=resident),      # b1 resident
            pl.BlockSpec((H_pad, D_pad), lambda i: (0, 0), pipeline_mode=resident),  # W2 resident
            pl.BlockSpec((1, D_pad), lambda i: (0, 0), pipeline_mode=resident),      # b2 resident
        ],
        out_specs=pl.BlockSpec((tile_b, D_pad), lambda i: (i, 0)),
        compiler_params=pltpu.CompilerParams(
            dimension_semantics=("parallel",),        # batch tiles independent (megacore)
            vmem_limit_bytes=vmem_limit,
        ),
        cost_estimate=cost,
    )(z_mm, w1, b1, w2, b2)

    # Glue: drop batch/feature padding and reshape to (B,) + image_shape.
    out = out[:B, :D]
    return out.reshape((B,) + tuple(image_shape))


def init_decoder_params(key, z_dim, image_shape, hidden_dim=400):
    """Deterministic synthetic parameters (Kaiming-uniform-ish like nn.Linear)."""
    d_out = int(np.prod(image_shape))
    k1, k2, k3, k4 = jax.random.split(key, 4)
    lim1 = 1.0 / np.sqrt(z_dim)
    lim2 = 1.0 / np.sqrt(hidden_dim)
    # Stored as (in, out) == PyTorch weight.T
    w1 = jax.random.uniform(k1, (z_dim, hidden_dim), jnp.float32, -lim1, lim1)
    b1 = jax.random.uniform(k2, (1, hidden_dim), jnp.float32, -lim1, lim1)
    w2 = jax.random.uniform(k3, (hidden_dim, d_out), jnp.float32, -lim2, lim2)
    b2 = jax.random.uniform(k4, (1, d_out), jnp.float32, -lim2, lim2)
    return w1, b1, w2, b2


def _reference_forward(z, w1, b1, w2, b2, image_shape):
    h = jnp.maximum(z @ w1 + b1, 0.0)
    x = jax.nn.sigmoid(h @ w2 + b2)
    return x.reshape((z.shape[0],) + tuple(image_shape))


if __name__ == "__main__":
    key = jax.random.PRNGKey(0)
    k_z, k_p = jax.random.split(key)

    # Small, forward-consistent shapes: latent dim 32, hidden 400, image 1x14x14
    # (prod=196 -> exercises the D padding 196->256 and the out[:, :D] slice).
    # batch=16 clamps tile_b to 8 -> grid=(2,), exercising the tiled/"parallel" path.
    batch = 16
    z_dim = 32
    image_shape = (1, 14, 14)

    z = jax.random.normal(k_z, (batch, z_dim), dtype=jnp.float32)
    w1, b1, w2, b2 = init_decoder_params(k_p, z_dim, image_shape)

    out = decoder_forward(z, w1, b1, w2, b2, image_shape)
    out = jax.block_until_ready(out)

    # Sanity check against plain-JAX f32 reference (bf16 matmul operands in the
    # kernel -> compare with a tolerance that covers the bf16 rounding).
    ref = _reference_forward(z, w1, b1, w2, b2, image_shape)
    assert out.shape == (batch,) + image_shape
    np.testing.assert_allclose(np.asarray(out), np.asarray(ref), rtol=1e-2, atol=1e-2)

    # TODO(synk): optionally emit bf16 output (out_shape dtype) on v5e to halve
    # HBM writeback if downstream consumers tolerate it; kept f32 here.
    print("KERNEL_OK")
</pallas_src>

<mosaic_0001>
module attributes {stable_mosaic.version = 11 : i64} {
  func.func @_decoder_kernel(%arg0: i32, %arg1: memref<8x32xbf16, #tpu.memory_space<vmem>>, %arg2: memref<32x512xbf16, #tpu.memory_space<vmem>>, %arg3: memref<1x512xf32, #tpu.memory_space<vmem>>, %arg4: memref<512x256xbf16, #tpu.memory_space<vmem>>, %arg5: memref<1x256xf32, #tpu.memory_space<vmem>>, %arg6: memref<8x256xf32, #tpu.memory_space<vmem>>) attributes {dimension_semantics = [#tpu.dimension_semantics<parallel>], iteration_bounds = array<i64: 2>, scalar_prefetch = 0 : i64, scratch_operands = 0 : i64, tpu.core_type = #tpu.core_type<tc>, window_params = [{transform_indices = @transform_0, window_bounds = array<i64: 8, 32>}, {pipeline_mode = #tpu.pipeline_mode<synchronous>, transform_indices = @transform_1, window_bounds = array<i64: 32, 512>}, {pipeline_mode = #tpu.pipeline_mode<synchronous>, transform_indices = @transform_2, window_bounds = array<i64: 1, 512>}, {pipeline_mode = #tpu.pipeline_mode<synchronous>, transform_indices = @transform_3, window_bounds = array<i64: 512, 256>}, {pipeline_mode = #tpu.pipeline_mode<synchronous>, transform_indices = @transform_4, window_bounds = array<i64: 1, 256>}, {transform_indices = @transform_5, window_bounds = array<i64: 8, 256>}]} {
    %c0 = arith.constant 0 : index
    %c0_0 = arith.constant 0 : index
    %0 = vector.load %arg1[%c0, %c0_0] : memref<8x32xbf16, #tpu.memory_space<vmem>>, vector<8x32xbf16>
    %c0_1 = arith.constant 0 : index
    %c0_2 = arith.constant 0 : index
    %1 = vector.load %arg2[%c0_1, %c0_2] : memref<32x512xbf16, #tpu.memory_space<vmem>>, vector<32x512xbf16>
    %cst = arith.constant dense<0.000000e+00> : vector<8x512xf32>
    %2 = tpu.matmul %0, %1, %cst {dimension_numbers = #tpu.dot_dimension_numbers<[1], [0], [0], [1], [0, 0, 1, 1], [], []>} : vector<8x32xbf16>, vector<32x512xbf16>, vector<8x512xf32> -> vector<8x512xf32>
    %c0_3 = arith.constant 0 : index
    %c0_4 = arith.constant 0 : index
    %3 = vector.load %arg3[%c0_3, %c0_4] : memref<1x512xf32, #tpu.memory_space<vmem>>, vector<1x512xf32>
    %4 = vector.broadcast %3 : vector<1x512xf32> to vector<8x512xf32>
    %5 = arith.addf %2, %4 : vector<8x512xf32>
    %cst_5 = arith.constant 0.000000e+00 : f32
    %6 = vector.broadcast %cst_5 : f32 to vector<8x512xf32>
    %7 = arith.maximumf %5, %6 : vector<8x512xf32>
    %8 = arith.truncf %7 : vector<8x512xf32> to vector<8x512xbf16>
    %c0_6 = arith.constant 0 : index
    %c0_7 = arith.constant 0 : index
    %9 = vector.load %arg4[%c0_6, %c0_7] : memref<512x256xbf16, #tpu.memory_space<vmem>>, vector<512x256xbf16>
    %cst_8 = arith.constant dense<0.000000e+00> : vector<8x256xf32>
    %10 = tpu.matmul %8, %9, %cst_8 {dimension_numbers = #tpu.dot_dimension_numbers<[1], [0], [0], [1], [0, 0, 1, 1], [], []>} : vector<8x512xbf16>, vector<512x256xbf16>, vector<8x256xf32> -> vector<8x256xf32>
    %c0_9 = arith.constant 0 : index
    %c0_10 = arith.constant 0 : index
    %11 = vector.load %arg5[%c0_9, %c0_10] : memref<1x256xf32, #tpu.memory_space<vmem>>, vector<1x256xf32>
    %12 = vector.broadcast %11 : vector<1x256xf32> to vector<8x256xf32>
    %13 = arith.addf %10, %12 : vector<8x256xf32>
    %14 = arith.negf %13 : vector<8x256xf32>
    %15 = math.exp %14 : vector<8x256xf32>
    %cst_11 = arith.constant 1.000000e+00 : f32
    %16 = vector.broadcast %cst_11 : f32 to vector<8x256xf32>
    %17 = arith.addf %16, %15 : vector<8x256xf32>
    %18 = arith.divf %16, %17 : vector<8x256xf32>
    %c0_12 = arith.constant 0 : index
    %c0_13 = arith.constant 0 : index
    %19 = vector.load %arg6[%c0_12, %c0_13] : memref<8x256xf32, #tpu.memory_space<vmem>>, vector<8x256xf32>
    tpu.vector_store %arg6[%c0_12, %c0_13], %18 {strides = array<i32>} : memref<8x256xf32, #tpu.memory_space<vmem>>, vector<8x256xf32>,
    return
  }
  func.func @transform_0(%arg0: i32) -> (i32, i32) {
    %c0_i32 = arith.constant 0 : i32
    %c0_i32_0 = arith.constant 0 : i32
    return %arg0, %c0_i32 : i32, i32
  }
  func.func @transform_1(%arg0: i32) -> (i32, i32) {
    %c0_i32 = arith.constant 0 : i32
    %c0_i32_0 = arith.constant 0 : i32
    %c0_i32_1 = arith.constant 0 : i32
    return %c0_i32, %c0_i32_0 : i32, i32
  }
  func.func @transform_2(%arg0: i32) -> (i32, i32) {
    %c0_i32 = arith.constant 0 : i32
    %c0_i32_0 = arith.constant 0 : i32
    %c0_i32_1 = arith.constant 0 : i32
    return %c0_i32, %c0_i32_0 : i32, i32
  }
  func.func @transform_3(%arg0: i32) -> (i32, i32) {
    %c0_i32 = arith.constant 0 : i32
    %c0_i32_0 = arith.constant 0 : i32
    %c0_i32_1 = arith.constant 0 : i32
    return %c0_i32, %c0_i32_0 : i32, i32
  }
  func.func @transform_4(%arg0: i32) -> (i32, i32) {
    %c0_i32 = arith.constant 0 : i32
    %c0_i32_0 = arith.constant 0 : i32
    %c0_i32_1 = arith.constant 0 : i32
    return %c0_i32, %c0_i32_0 : i32, i32
  }
  func.func @transform_5(%arg0: i32) -> (i32, i32) {
    %c0_i32 = arith.constant 0 : i32
    %c0_i32_0 = arith.constant 0 : i32
    return %arg0, %c0_i32 : i32, i32
  }
}

</mosaic_0001>

<bundles_post_ra>
// kernel: tpu_custom_call.1
= control target key start
LH: loop header
LB: loop body
LE: loop exit
PB: predicated region body
PF: predicated region fallthrough
CT: control target
= control target key end

     0   :  { %10 = vsyncpa [#allocation3], 0  ;;  %s1939_s0 = inlined_call_operand.hbm [shape: bf16[16,32], index: 0, kind: input, shape index: {}]   ;;  %s1940_s1 = inlined_call_operand.hbm [shape: bf16[32,512], index: 1, kind: input, shape index: {}]   ;;  %s1941_s2 = inlined_call_operand.hbm [shape: f32[1,512], index: 2, kind: input, shape index: {}]   ;;  %s1942_s3 = inlined_call_operand.hbm [shape: bf16[512,256], index: 3, kind: input, shape index: {}]   ;;  %s1943_s4 = inlined_call_operand.vmem [shape: f32[1,256], index: 4, kind: input, shape index: {}]   ;;  %s1944_s5 = inlined_call_operand.hbm [shape: f32[16,256], index: 5, kind: output, shape index: {}]  }
   0x1   :  { %12 = vsyncpa [#allocation3 + $0x1], 0 }
   0x2   :  { %13 = vsyncpa [#allocation6], 0 }
   0x3   :  { %14 = vsyncpa [#allocation9], 0 }
   0x4   :  { %15 = vsyncpa [#allocation4], 0 }
   0x5   :  { %17 = vsyncpa [#allocation4 + $0x1], 0  ;;  %s1772_s18 = smov 0   ;;  %s1774_s19 = smov 0  }
   0x6   :  { %s1776_s20 = smov 0   ;;  %s1778_s21 = smov 0  }
   0x7 LB: > { %s175_s24 = sshll.u32 %s1940_s1, 4  ;;  %s1796_s25 = sadd.s32 4294967295, %s1733_s21   ;;  %s1733_s21 = sphi %s1778_s21, %s1955_s21   ;;  %s1729_s20 = sphi %s1776_s20, %s1954_s20   ;;  %s1725_s19 = sphi %s1774_s19, %s1953_s19   ;;  %s1721_s18 = sphi %s1772_s18, %s1952_s18   ;;  %s176_s24 = int_to_ptr.hbm [resolvable:$true] %s175_s24 }
   0x8   : > { %p1065_p0 = scmp.ge.s32.totalorder %s1733_s21, 1  ;;  %p44_p1 = scmp.eq.s32.totalorder %s1796_s25, 0 }
   0x9   : > { %p164_p2 = scmp.lt.s32.totalorder %s1733_s21, 3  ;;  %s1735_s27 = smov [#allocation5]  }
   0xa   : > { %s177_s28 = sshll.u32 %s1735_s27, 4  ;;  %s190_s6 = sshll.u32 %s1941_s2, 4  ;;  %s178_s28 = int_to_ptr.vmem [resolvable:$true] %s177_s28  ;;  %s191_s6 = int_to_ptr.hbm [resolvable:$true] %s190_s6 }
   0xb   : > { %p1801_p3 = pnand %p1065_p0, %p164_p2  ;;  %s201_s10 = sshll.u32 %s1942_s3, 4  ;;  %s202_s10 = int_to_ptr.hbm [resolvable:$true] %s201_s10 }
   0xc   : > { %s1736_s11 = smov [#allocation7]   ;;  %s1737_s13 = smov 256  }
   0xd   : > { %p1466_p4 = pneg %p1801_p3  ;;  %s192_s12 = sshll.u32 %s1736_s11, 4  ;;  %s193_s12 = int_to_ptr.vmem [resolvable:$true] %s192_s12 }
   0xe   : > { %s1738_s14 = smov 16   ;;  %s1739_s15 = smov [#allocation8]  }
   0xf   : > { %p1813_p6 = pnand %p1466_p4, %p44_p1  ;;  %s203_s16 = sshll.u32 %s1739_s15, 4  ;;  %s204_s16 = int_to_ptr.vmem [resolvable:$true] %s203_s16 }
  0x10   : > { %s1740_s17 = smov 128   ;;  %s1741_s22 = smov 8  }
  0x11   : > { %1469 = dma.hbm_to_vmem [thread:$0]  (!%p1813_p6), %s176_s24, 1024, %s178_s28, [#allocation6], %s1737_s13, %s1737_s13, %s1738_s14  }
  0x12   : > { %1472 = dma.hbm_to_vmem [thread:$0]  (!%p1813_p6), %s191_s6, 64, %s193_s12, [#allocation6]  }
  0x13   : > { %1475 = dma.hbm_to_vmem [thread:$0]  (!%p1813_p6), %s202_s10, 8192, %s204_s16, [#allocation9], %s1740_s17, %s1740_s17, %s1741_s22  }
  0x14   : > { %s1064_s23 = sadd.s32 4294967294, %s1733_s21   ;;  %s1828_s24 = sadd.s32 1, %s1733_s21  }
  0x15   : > { %s30_s27 = sadd.s32 1, %s1729_s20  ;;  %s27_s28 = ssub.s32 %s1733_s21, %s1828_s24 }
  0x16   : > { %p37_p7 = scmp.ne.s32.totalorder %s1729_s20, %s1725_s19  ;;  %p28_p8 = scmp.eq.s32.totalorder %s27_s28, 0 }
  0x17   : > { %p38_p9 = scmp.eq.s32.totalorder %s1733_s21, 0  ;;  %p43_p10 = scmp.ne.s32.totalorder %s1725_s19, %s1721_s18 }
  0x18   : > { %p151_p11 = scmp.eq.s32.totalorder %s1796_s25, 1  ;;  %p157_p0 = scmp.eq.s32.totalorder %s1064_s23, 1 }
  0x19   : > { %s1840_s29 = scalar_select %p28_p8, %s1729_s20, %s30_s27  }
  0x1a   : > { %p1844_p12 = por %p44_p1, %p43_p10  ;;  %p1848_p13 = por %p151_p11, %p37_p7 }
  0x1b   : > { %p39_p2 = por %p38_p9, %p37_p7  ;;  %s220_s7 = sand.u32 1, %s1729_s20  }
  0x1c   : > { %p1853_p4 = por %p157_p0, %p43_p10  ;;  %p1487_p6 = scmp.lt.s32.totalorder %s1733_s21, 2 }
  0x1d   : > { %s1070_s9 = sshll.u32 %s220_s7, 2  ;;  %s1071_s10 = sshll.u32 %s1733_s21, 2 }
  0x1e   : > { %s228_s13 = scalar_lea.hbm %s1939_s0, %s1071_s10  ;;  %s224_s15 = scalar_lea.vmem [#allocation2], %s1070_s9 }
  0x1f   : > { %s230_s14 = sshll.u32 %s228_s13, 4  ;;  %s232_s16 = sshll.u32 %s224_s15, 4  ;;  %s231_s14 = int_to_ptr.hbm [resolvable:$true] %s230_s14  ;;  %s233_s16 = int_to_ptr.vmem [resolvable:$true] %s232_s16 }
  0x20   : > { %p1862_p8 = pnand %p1487_p6, %p39_p2  ;;  %s221_s22 = scalar_lea.sflag [#allocation3], %s220_s7 }
  0x21   : > { %s1629_s23 = sshra.s32 %s231_s14, 4  ;;  %s1636_s9 = scalar_lea.hbm %s1939_s0, 8  ;;  %s1630_s23 = int_to_ptr.hbm [resolvable:$true] %s1629_s23 }
  0x22   : > { %s1631_s27 = scalar_lea.hbm %s1630_s23, 4  ;;  %p1633_p9 = pneg %p1862_p8 }
  0x23   : > { %p1632_p7 = scmp.ne.s32.totalorder %s1630_s23, %s1631_s27  ;;  %p1637_p0 = scmp.lt.s32.totalorder %s1630_s23, %s1939_s0 }
  0x24   : > { %p1638_p2 = scmp.lt.s32.totalorder %s1636_s9, %s1631_s27 }
  0x25   : > { %p1634_p10 = pnand %p1633_p9, %p1632_p7 }
  0x26   : > { %p1639_p6 = por %p1638_p2, %p1637_p0 }
  0x27   : > { %p1635_p11 = pneg %p1634_p10 }
  0x29   : > { %p1640_p5 = pnand %p1639_p6, %p1635_p11 }
  0x2b   : > { %1643 = shalt.err (!%p1640_p5)
}
  0x2c   : > { %1479 = dma.hbm_to_vmem [thread:$0]  (!%p1862_p8), %s231_s14, 64, %s233_s16, %s221_s22  }
  0x2d   : > { %241 = sbr.rel (%p1801_p3) target bundleno = 389 (0x185), region = 40  ;;  %s1879_s7 = sand.u32 (!%p1801_p3), 1, %s1725_s19  }
  0x2e   : > { %s1073_s13 = sshll.u32 (!%p1801_p3), %s1879_s7, 2  ;;  %s244_s15 = scalar_lea.sflag (!%p1801_p3), [#allocation3], %s1879_s7 }
  0x2f   : > { %s1883_s28 = scalar_lea.vmem (!%p1801_p3), [#allocation2], %s1073_s13 }
  0x32   : > { %1704 = dma.done.wait (%p1844_p12), %s244_s15, 64  }
  0x33   : > { %1706 = vsyncadd (%p1844_p12), %s244_s15, 4294967232 }
  0x34   : > { %1708 = dma.done.wait (%p44_p1), [#allocation6], 1088  }
  0x35   : > { %1710 = vsyncadd (%p44_p1), [#allocation6], 4294966208 }
  0x36   : > { %1712 = dma.done.wait (%p44_p1), [#allocation9], 8192  }
  0x37   : > { %1714 = vsyncadd (%p44_p1), [#allocation9], 4294959104  ;;  %vm350_vm0 = vcmask 261120   ;;  %v1096_v0 = vld [vmem:[#allocation5 + $0x20] sm:$0xf]  ;;  %s1077_s14 = sshll.u32 %s1879_s7, 4 }
  0x38   : > { %v1383_v1 = vld [vmem:[#allocation5 + $0x2c] sm:$0xf0]  ;;  %v1381_v2 = vld [vmem:[#allocation5 + $0x24] sm:$0xf]  ;;  %v1098_v4 = vld [vmem:[#allocation5 + $0x30] sm:$0xf0] }
  0x39   : > { %v1097_v3 = vor.u32 %v1383_v1, %v1096_v0  ;;  %v1104_v5 = vld [vmem:[#allocation5 + $0x28] sm:$0xf]  ;;  %v1384_v6 = vld [vmem:[#allocation5 + $0x34] sm:$0xf0]  ;;  %v1101_v7 = vor.u32 %v1381_v2, %v1098_v4  ;;  %v1382_v9 = vld [vmem:[#allocation5 + $0x2c] sm:$0xf] }
  0x3a   : > { %v1105_v8 = vor.u32 %v1384_v6, %v1104_v5  ;;  %v1106_v10 = vld [vmem:[#allocation5 + $0x38] sm:$0xf0]  ;;  %v1080_v11 = vld [vmem:[#allocation5] sm:$0xf]  ;;  %v1379_v13 = vld [vmem:[#allocation5 + $0xc] sm:$0xf0] }
  0x3b   : > { %360 = vmatpush.bf16.msra.mxu0 %v1097_v3  ;;  %v1109_v12 = vor.u32 %v1382_v9, %v1106_v10  ;;  %v1377_v14 = vld [vmem:[#allocation5 + $0x4] sm:$0xf]  ;;  %v1082_v15 = vld [vmem:[#allocation5 + $0x10] sm:$0xf0]  ;;  %373 = vmatpush.bf16.msra.mxu1 %v1101_v7  ;;  %v1081_v16 = vor.u32 %v1379_v13, %v1080_v11  ;;  %v1088_v18 = vld [vmem:[#allocation5 + $0x8] sm:$0xf] }
  0x3c   : > { %386 = vmatpush.bf16.msra.mxu2 %v1105_v8  ;;  %v1085_v17 = vor.u32 %v1377_v14, %v1082_v15  ;;  %v1380_v19 = vld [vmem:[#allocation5 + $0x14] sm:$0xf0]  ;;  %v1378_v20 = vld [vmem:[#allocation5 + $0xc] sm:$0xf]  ;;  %v1090_v22 = vld [vmem:[#allocation5 + $0x18] sm:$0xf0] }
  0x3d   : > { %399 = vmatpush.bf16.msra.mxu3 %v1109_v12  ;;  %v1089_v21 = vor.u32 %v1380_v19, %v1088_v18  ;;  %v291_v23 = vld [vmem:[%s1883_s28] sm:$0xf]  ;;  %v1172_v24 = vld [vmem:[#allocation8 + $0x70] sm:$0xf]  ;;  %v1093_v25 = vor.u32 %v1378_v20, %v1090_v22  ;;  %v1164_v31 = vld [vmem:[#allocation8 + $0x60] sm:$0xf] }
  0x3e   : > { %v1400_v26 = vld [vmem:[#allocation8 + $0x74] sm:$0xf0]  ;;  %v1236_v27 = vld [vmem:[#allocation8 + $0xf0] sm:$0xf]  ;;  %v1398_v32 = vld [vmem:[#allocation8 + $0x64] sm:$0xf0] }
  0x3f   : > { %v1416_v28 = vld [vmem:[#allocation8 + $0xf4] sm:$0xf0]  ;;  %361 = vmatpush.bf16.msra.mxu0 %v1081_v16  ;;  %v1173_v29 = vor.u32 %v1400_v26, %v1172_v24  ;;  %v1228_v33 = vld [vmem:[#allocation8 + $0xe0] sm:$0xf]  ;;  %374 = vmatpush.bf16.msra.mxu1 %v1085_v17  ;;  %v1414_v34 = vld [vmem:[#allocation8 + $0xe4] sm:$0xf0]  ;;  %v1165_v37 = vor.u32 %v1398_v32, %v1164_v31 }
  0x40   : > { %v1237_v30 = vor.u32 %v1416_v28, %v1236_v27  ;;  %387 = vmatpush.bf16.msra.mxu2 %v1089_v21  ;;  %v1300_v35 = vld [vmem:[#allocation8 + $0x170] sm:$0xf]  ;;  %v1432_v36 = vld [vmem:[#allocation8 + $0x174] sm:$0xf0]  ;;  %v1229_v42 = vor.u32 %v1414_v34, %v1228_v33  ;;  %v1292_v47 = vld [vmem:[#allocation8 + $0x160] sm:$0xf] }
  0x41   : > { %400 = vmatpush.bf16.msra.mxu3 %v1093_v25  ;;  %v1301_v38 = vor.u32 %v1432_v36, %v1300_v35  ;;  %v1364_v39 = vld [vmem:[#allocation8 + $0x1f0] sm:$0xf]  ;;  %v1448_v40 = vld [vmem:[#allocation8 + $0x1f4] sm:$0xf0]  ;;  %v1430_v48 = vld [vmem:[#allocation8 + $0x164] sm:$0xf0] }
  0x42   : > { %v1156_v41 = vld [vmem:[#allocation8 + $0x50] sm:$0xf]  ;;  %1110 = vmatmul.msk.bf16.vlgmr.msra.gmra.mxu0 %vm350_vm0, %v291_v23  ;;  %v1365_v43 = vor.u32 %v1448_v40, %v1364_v39  ;;  %v1396_v44 = vld [vmem:[#allocation8 + $0x54] sm:$0xf0]  ;;  %1111 = vmatmul.msk.bf16.vlgmr.msra.gmra.mxu1 %vm350_vm0, %v291_v23  ;;  %v1356_v49 = vld [vmem:[#allocation8 + $0x1e0] sm:$0xf]  ;;  %v1293_v50 = vor.u32 %v1430_v48, %v1292_v47 }
  0x43   : > { %804 = vmatpush.bf16.msrb.mxu0 %v1173_v29  ;;  %817 = vmatpush.bf16.msrb.mxu1 %v1237_v30  ;;  %v1220_v45 = vld [vmem:[#allocation8 + $0xd0] sm:$0xf]  ;;  %v1412_v46 = vld [vmem:[#allocation8 + $0xd4] sm:$0xf0]  ;;  %v1446_v51 = vld [vmem:[#allocation8 + $0x1e4] sm:$0xf0]  ;;  %v1157_v52 = vor.u32 %v1396_v44, %v1156_v41 }
  0x44   : > { %1112 = vmatmul.msk.bf16.vlgmr.msra.gmra.mxu2 %vm350_vm0, %v291_v23  ;;  %1113 = vmatmul.msk.bf16.vlgmr.msra.gmra.mxu3 %vm350_vm0, %v291_v23  ;;  %v1357_v53 = vor.u32 %v1446_v51, %v1356_v49  ;;  %v1148_v54 = vld [vmem:[#allocation8 + $0x40] sm:$0xf]  ;;  %v1394_v55 = vld [vmem:[#allocation8 + $0x44] sm:$0xf0]  ;;  %v1284_v56 = vld [vmem:[#allocation8 + $0x150] sm:$0xf]  ;;  %v1221_v57 = vor.u32 %v1412_v46, %v1220_v45 }
  0x45   : > { %830 = vmatpush.bf16.msrb.mxu2 %v1301_v38  ;;  %843 = vmatpush.bf16.msrb.mxu3 %v1365_v43  ;;  %v1428_v58 = vld [vmem:[#allocation8 + $0x154] sm:$0xf0]  ;;  %v1348_v59 = vld [vmem:[#allocation8 + $0x1d0] sm:$0xf]  ;;  %v1212_v61 = vld [vmem:[#allocation8 + $0xc0] sm:$0xf]  ;;  %v1149_v0 = vor.u32 %v1394_v55, %v1148_v54 }
  0x46   : > { %v1444_v60 = vld [vmem:[#allocation8 + $0x1d4] sm:$0xf0]  ;;  %v1410_v62 = vld [vmem:[#allocation8 + $0xc4] sm:$0xf0]  ;;  %v1285_v63 = vor.u32 %v1428_v58, %v1284_v56  ;;  %v1140_v2 = vld [vmem:[#allocation8 + $0x30] sm:$0xf] }
  0x47   : > { %805 = vmatpush.bf16.msrb.mxu0 %v1165_v37  ;;  %818 = vmatpush.bf16.msrb.mxu1 %v1229_v42  ;;  %v1349_v1 = vor.u32 %v1444_v60, %v1348_v59  ;;  %v1276_v3 = vld [vmem:[#allocation8 + $0x140] sm:$0xf]  ;;  %v1426_v4 = vld [vmem:[#allocation8 + $0x144] sm:$0xf0]  ;;  %v1213_v5 = vor.u32 %v1410_v62, %v1212_v61  ;;  %v1392_v6 = vld [vmem:[#allocation8 + $0x34] sm:$0xf0] }
  0x48   : > { %v1340_v7 = vld [vmem:[#allocation8 + $0x1c0] sm:$0xf]  ;;  %v1442_v8 = vld [vmem:[#allocation8 + $0x1c4] sm:$0xf0]  ;;  %v1204_v9 = vld [vmem:[#allocation8 + $0xb0] sm:$0xf]  ;;  %v1277_v11 = vor.u32 %v1426_v4, %v1276_v3  ;;  %v1141_v12 = vor.u32 %v1392_v6, %v1140_v2 }
  0x49   : > { %831 = vmatpush.bf16.msrb.mxu2 %v1293_v50  ;;  %844 = vmatpush.bf16.msrb.mxu3 %v1357_v53  ;;  %v1408_v10 = vld [vmem:[#allocation8 + $0xb4] sm:$0xf0]  ;;  %v1341_v13 = vor.u32 %v1442_v8, %v1340_v7  ;;  %v1132_v14 = vld [vmem:[#allocation8 + $0x20] sm:$0xf]  ;;  %v1268_v15 = vld [vmem:[#allocation8 + $0x130] sm:$0xf] }
  0x4a   : > { %v1424_v16 = vld [vmem:[#allocation8 + $0x134] sm:$0xf0]  ;;  %v1205_v17 = vor.u32 %v1408_v10, %v1204_v9  ;;  %v1390_v18 = vld [vmem:[#allocation8 + $0x24] sm:$0xf0]  ;;  %v1332_v19 = vld [vmem:[#allocation8 + $0x1b0] sm:$0xf] }
  0x4b   : > { %806 = vmatpush.bf16.msrb.mxu0 %v1157_v52  ;;  %819 = vmatpush.bf16.msrb.mxu1 %v1221_v57  ;;  %v1440_v20 = vld [vmem:[#allocation8 + $0x1b4] sm:$0xf0]  ;;  %v1196_v21 = vld [vmem:[#allocation8 + $0xa0] sm:$0xf]  ;;  %v1406_v22 = vld [vmem:[#allocation8 + $0xa4] sm:$0xf0]  ;;  %v1269_v23 = vor.u32 %v1424_v16, %v1268_v15  ;;  %v1133_v24 = vor.u32 %v1390_v18, %v1132_v14 }
  0x4c   : > { %v1333_v25 = vor.u32 %v1440_v20, %v1332_v19  ;;  %v1124_v26 = vld [vmem:[#allocation8 + $0x10] sm:$0xf]  ;;  %v1260_v27 = vld [vmem:[#allocation8 + $0x120] sm:$0xf]  ;;  %v1422_v28 = vld [vmem:[#allocation8 + $0x124] sm:$0xf0]  ;;  %v1197_v29 = vor.u32 %v1406_v22, %v1196_v21 }
  0x4d   : > { %832 = vmatpush.bf16.msrb.mxu2 %v1285_v63  ;;  %845 = vmatpush.bf16.msrb.mxu3 %v1349_v1  ;;  %v1388_v30 = vld [vmem:[#allocation8 + $0x14] sm:$0xf0]  ;;  %v1324_v31 = vld [vmem:[#allocation8 + $0x1a0] sm:$0xf]  ;;  %v1438_v32 = vld [vmem:[#allocation8 + $0x1a4] sm:$0xf0]  ;;  %v1261_v35 = vor.u32 %v1422_v28, %v1260_v27 }
  0x4e   : > { %v1188_v33 = vld [vmem:[#allocation8 + $0x90] sm:$0xf]  ;;  %v1404_v34 = vld [vmem:[#allocation8 + $0x94] sm:$0xf0]  ;;  %v1116_v36 = vld [vmem:[#allocation8] sm:$0xf]  ;;  %v1125_v37 = vor.u32 %v1388_v30, %v1124_v26  ;;  %v1325_v38 = vor.u32 %v1438_v32, %v1324_v31 }
  0x4f   : > { %807 = vmatpush.bf16.msrb.mxu0 %v1149_v0  ;;  %820 = vmatpush.bf16.msrb.mxu1 %v1213_v5  ;;  %v1386_v39 = vld [vmem:[#allocation8 + $0x4] sm:$0xf0]  ;;  %v1252_v40 = vld [vmem:[#allocation8 + $0x110] sm:$0xf]  ;;  %v1420_v41 = vld [vmem:[#allocation8 + $0x114] sm:$0xf0]  ;;  %v1189_v42 = vor.u32 %v1404_v34, %v1188_v33 }
  0x50   : > { %v1180_v43 = vld [vmem:[#allocation8 + $0x80] sm:$0xf]  ;;  %v1316_v44 = vld [vmem:[#allocation8 + $0x190] sm:$0xf]  ;;  %v1436_v45 = vld [vmem:[#allocation8 + $0x194] sm:$0xf0]  ;;  %v1253_v51 = vor.u32 %v1420_v41, %v1252_v40  ;;  %v1117_v52 = vor.u32 %v1386_v39, %v1116_v36 }
  0x51   : > { %833 = vmatpush.bf16.msrb.mxu2 %v1277_v11  ;;  %846 = vmatpush.bf16.msrb.mxu3 %v1341_v13  ;;  %v1402_v46 = vld [vmem:[#allocation8 + $0x84] sm:$0xf0]  ;;  %v1399_v47 = vld [vmem:[#allocation8 + $0x74] sm:$0xf]  ;;  %v1174_v48 = vld [vmem:[#allocation8 + $0x78] sm:$0xf0]  ;;  %v1317_v53 = vor.u32 %v1436_v45, %v1316_v44 }
  0x52   : > { %v1415_v49 = vld [vmem:[#allocation8 + $0xf4] sm:$0xf]  ;;  %v1238_v50 = vld [vmem:[#allocation8 + $0xf8] sm:$0xf0]  ;;  %v1397_v54 = vld [vmem:[#allocation8 + $0x64] sm:$0xf]  ;;  %v1181_v58 = vor.u32 %v1402_v46, %v1180_v43  ;;  %v1177_v59 = vor.u32 %v1399_v47, %v1174_v48 }
  0x53   : > { %808 = vmatpush.bf16.msrb.mxu0 %v1141_v12  ;;  %821 = vmatpush.bf16.msrb.mxu1 %v1205_v17  ;;  %v1244_v55 = vld [vmem:[#allocation8 + $0x100] sm:$0xf]  ;;  %v1418_v56 = vld [vmem:[#allocation8 + $0x104] sm:$0xf0]  ;;  %v1431_v61 = vld [vmem:[#allocation8 + $0x174] sm:$0xf]  ;;  %v1241_v63 = vor.u32 %v1415_v49, %v1238_v50 }
  0x54   : > { %v1308_v57 = vld [vmem:[#allocation8 + $0x180] sm:$0xf]  ;;  %v1434_v60 = vld [vmem:[#allocation8 + $0x184] sm:$0xf0]  ;;  %v1302_v62 = vld [vmem:[#allocation8 + $0x178] sm:$0xf0]  ;;  %v1245_v5 = vor.u32 %v1418_v56, %v1244_v55 }
  0x55   : > { %834 = vmatpush.bf16.msrb.mxu2 %v1269_v23  ;;  %847 = vmatpush.bf16.msrb.mxu3 %v1333_v25  ;;  %v1166_v0 = vld [vmem:[#allocation8 + $0x68] sm:$0xf0]  ;;  %v1447_v1 = vld [vmem:[#allocation8 + $0x1f4] sm:$0xf]  ;;  %v1366_v2 = vld [vmem:[#allocation8 + $0x1f8] sm:$0xf0]  ;;  %v1309_v6 = vor.u32 %v1434_v60, %v1308_v57  ;;  %v1305_v7 = vor.u32 %v1431_v61, %v1302_v62 }
  0x56   : > { %v1413_v3 = vld [vmem:[#allocation8 + $0xe4] sm:$0xf]  ;;  %v1230_v4 = vld [vmem:[#allocation8 + $0xe8] sm:$0xf0]  ;;  %v1169_v8 = vor.u32 %v1397_v54, %v1166_v0  ;;  %v1369_v9 = vor.u32 %v1447_v1, %v1366_v2  ;;  %v1395_v11 = vld [vmem:[#allocation8 + $0x54] sm:$0xf] }
  0x57   : > { %809 = vmatpush.bf16.msrb.mxu0 %v1133_v24  ;;  %822 = vmatpush.bf16.msrb.mxu1 %v1197_v29  ;;  %v1233_v10 = vor.u32 %v1413_v3, %v1230_v4  ;;  %v1158_v12 = vld [vmem:[#allocation8 + $0x58] sm:$0xf0]  ;;  %v1411_v13 = vld [vmem:[#allocation8 + $0xd4] sm:$0xf]  ;;  %v1429_v17 = vld [vmem:[#allocation8 + $0x164] sm:$0xf] }
  0x58   : > { %v1161_v14 = vor.u32 %v1395_v11, %v1158_v12  ;;  %v1222_v15 = vld [vmem:[#allocation8 + $0xd8] sm:$0xf0]  ;;  %v1294_v18 = vld [vmem:[#allocation8 + $0x168] sm:$0xf0]  ;;  %v1445_v20 = vld [vmem:[#allocation8 + $0x1e4] sm:$0xf] }
  0x59   : > { %835 = vmatpush.bf16.msrb.mxu2 %v1261_v35  ;;  %848 = vmatpush.bf16.msrb.mxu3 %v1325_v38  ;;  %v1225_v16 = vor.u32 %v1411_v13, %v1222_v15  ;;  %v1297_v19 = vor.u32 %v1429_v17, %v1294_v18  ;;  %v1358_v21 = vld [vmem:[#allocation8 + $0x1e8] sm:$0xf0]  ;;  %v1393_v23 = vld [vmem:[#allocation8 + $0x44] sm:$0xf]  ;;  %v1427_v29 = vld [vmem:[#allocation8 + $0x154] sm:$0xf] }
  0x5a   : > { %v1361_v22 = vor.u32 %v1445_v20, %v1358_v21  ;;  %v1150_v24 = vld [vmem:[#allocation8 + $0x48] sm:$0xf0]  ;;  %v1409_v25 = vld [vmem:[#allocation8 + $0xc4] sm:$0xf]  ;;  %v1286_v30 = vld [vmem:[#allocation8 + $0x158] sm:$0xf0] }
  0x5b   : > { %810 = vmatpush.bf16.msrb.mxu0 %v1125_v37  ;;  %823 = vmatpush.bf16.msrb.mxu1 %v1189_v42  ;;  %v1153_v26 = vor.u32 %v1393_v23, %v1150_v24  ;;  %v1214_v27 = vld [vmem:[#allocation8 + $0xc8] sm:$0xf0]  ;;  %v1443_v31 = vld [vmem:[#allocation8 + $0x1d4] sm:$0xf]  ;;  %v1289_v32 = vor.u32 %v1427_v29, %v1286_v30  ;;  %v1350_v33 = vld [vmem:[#allocation8 + $0x1d8] sm:$0xf0] }
  0x5c   : > { %v1217_v28 = vor.u32 %v1409_v25, %v1214_v27  ;;  %v1353_v34 = vor.u32 %v1443_v31, %v1350_v33  ;;  %v1391_v35 = vld [vmem:[#allocation8 + $0x34] sm:$0xf]  ;;  %v1142_v36 = vld [vmem:[#allocation8 + $0x38] sm:$0xf0]  ;;  %v1425_v41 = vld [vmem:[#allocation8 + $0x144] sm:$0xf] }
  0x5d   : > { %836 = vmatpush.bf16.msrb.mxu2 %v1253_v51  ;;  %849 = vmatpush.bf16.msrb.mxu3 %v1317_v53  ;;  %v1145_v37 = vor.u32 %v1391_v35, %v1142_v36  ;;  %v1407_v38 = vld [vmem:[#allocation8 + $0xb4] sm:$0xf]  ;;  %v1206_v39 = vld [vmem:[#allocation8 + $0xb8] sm:$0xf0]  ;;  %v1278_v42 = vld [vmem:[#allocation8 + $0x148] sm:$0xf0] }
  0x5e   : > { %v1209_v40 = vor.u32 %v1407_v38, %v1206_v39  ;;  %v1441_v43 = vld [vmem:[#allocation8 + $0x1c4] sm:$0xf]  ;;  %v1281_v44 = vor.u32 %v1425_v41, %v1278_v42  ;;  %v1342_v45 = vld [vmem:[#allocation8 + $0x1c8] sm:$0xf0]  ;;  %v1423_v53 = vld [vmem:[#allocation8 + $0x134] sm:$0xf] }
  0x5f   : > { %811 = vmatpush.bf16.msrb.mxu0 %v1117_v52  ;;  %824 = vmatpush.bf16.msrb.mxu1 %v1181_v58  ;;  %v1345_v46 = vor.u32 %v1441_v43, %v1342_v45  ;;  %v1389_v47 = vld [vmem:[#allocation8 + $0x24] sm:$0xf]  ;;  %v1134_v48 = vld [vmem:[#allocation8 + $0x28] sm:$0xf0]  ;;  %v1270_v54 = vld [vmem:[#allocation8 + $0x138] sm:$0xf0] }
  0x60   : > { %v1405_v49 = vld [vmem:[#allocation8 + $0xa4] sm:$0xf]  ;;  %v1137_v50 = vor.u32 %v1389_v47, %v1134_v48  ;;  %v1198_v51 = vld [vmem:[#allocation8 + $0xa8] sm:$0xf0]  ;;  %v1439_v55 = vld [vmem:[#allocation8 + $0x1b4] sm:$0xf]  ;;  %v1273_v56 = vor.u32 %v1423_v53, %v1270_v54 }
  0x61   : > { %837 = vmatpush.bf16.msrb.mxu2 %v1245_v5  ;;  %850 = vmatpush.bf16.msrb.mxu3 %v1309_v6  ;;  %v1201_v52 = vor.u32 %v1405_v49, %v1198_v51  ;;  %v1334_v57 = vld [vmem:[#allocation8 + $0x1b8] sm:$0xf0]  ;;  %v1403_v61 = vld [vmem:[#allocation8 + $0x94] sm:$0xf]  ;;  %v1421_v0 = vld [vmem:[#allocation8 + $0x124] sm:$0xf] }
  0x62   : > { %v1337_v58 = vor.u32 %v1439_v55, %v1334_v57  ;;  %v1126_v60 = vld [vmem:[#allocation8 + $0x18] sm:$0xf0]  ;;  %v1262_v1 = vld [vmem:[#allocation8 + $0x128] sm:$0xf0]  ;;  %v1437_v4 = vld [vmem:[#allocation8 + $0x1a4] sm:$0xf] }
  0x63   : > { %856 = vmatpush.bf16.msra.mxu0 %v1177_v59  ;;  %869 = vmatpush.bf16.msra.mxu1 %v1241_v63  ;;  %v1387_v59 = vld [vmem:[#allocation8 + $0x14] sm:$0xf]  ;;  %v1190_v63 = vld [vmem:[#allocation8 + $0x98] sm:$0xf0]  ;;  %v1265_v3 = vor.u32 %v1421_v0, %v1262_v1  ;;  %v1326_v5 = vld [vmem:[#allocation8 + $0x1a8] sm:$0xf0] }
  0x64   : > { %v1129_v62 = vor.u32 %v1387_v59, %v1126_v60  ;;  %v1193_v2 = vor.u32 %v1403_v61, %v1190_v63  ;;  %v1385_v6 = vld [vmem:[#allocation8 + $0x4] sm:$0xf]  ;;  %v1419_v13 = vld [vmem:[#allocation8 + $0x114] sm:$0xf]  ;;  %v1318_v17 = vld [vmem:[#allocation8 + $0x198] sm:$0xf0] }
  0x65   : > { %882 = vmatpush.bf16.msra.mxu2 %v1305_v7  ;;  %895 = vmatpush.bf16.msra.mxu3 %v1369_v9  ;;  %v1329_v7 = vor.u32 %v1437_v4, %v1326_v5  ;;  %v1401_v9 = vld [vmem:[#allocation8 + $0x84] sm:$0xf]  ;;  %v1435_v15 = vld [vmem:[#allocation8 + $0x194] sm:$0xf]  ;;  %v1246_v20 = vld [vmem:[#allocation8 + $0x108] sm:$0xf0] }
  0x66   : > { %v1321_v18 = vor.u32 %v1435_v15, %v1318_v17  ;;  %v1433_v21 = vld [vmem:[#allocation8 + $0x184] sm:$0xf]  ;;  %v1310_v23 = vld [vmem:[#allocation8 + $0x188] sm:$0xf0]  ;;  %v300_v24 = vld [vmem:[#allocation7] sm:$0xf] }
  0x67   : > { %857 = vmatpush.bf16.msra.mxu0 %v1169_v8  ;;  %870 = vmatpush.bf16.msra.mxu1 %v1233_v10  ;;  %v1118_v8 = vld [vmem:[#allocation8 + $0x8] sm:$0xf0]  ;;  %v1313_v25 = vor.u32 %v1433_v21, %v1310_v23  ;;  %v303_v27 = vperm.slane %v300_v24, 1  ;;  %v305_v36 = vperm.slane %v300_v24, 3  ;;  %s289_s16 = scalar_lea.vmem [#allocation10], %s1077_s14  ;;  %s1449_s17 = sshll.u32 %s1796_s25, 4 }
  0x68   : > { %v1182_v10 = vld [vmem:[#allocation8 + $0x88] sm:$0xf0]  ;;  %v1121_v11 = vor.u32 %v1385_v6, %v1118_v8  ;;  %s960_s27 = scalar_lea.hbm %s1944_s5, %s1449_s17  ;;  %s962_s10 = sshll.u32 %s289_s16, 4  ;;  %s963_s10 = int_to_ptr.vmem [resolvable:$true] %s962_s10 }
  0x69   : > { %883 = vmatpush.bf16.msra.mxu2 %v1297_v19  ;;  %896 = vmatpush.bf16.msra.mxu3 %v1361_v22  ;;  %v1185_v12 = vor.u32 %v1401_v9, %v1182_v10  ;;  %v1417_v19 = vld [vmem:[#allocation8 + $0x104] sm:$0xf]  ;;  %s964_s9 = sshll.u32 %s960_s27, 4  ;;  %s949_s25 = scalar_lea.sflag [#allocation4], %s1879_s7  ;;  %s965_s9 = int_to_ptr.hbm [resolvable:$true] %s964_s9 }
  0x6a   : > { %v1249_v22 = vor.u32 %v1417_v19, %v1246_v20  ;;  %s1673_s11 = sshra.s32 %s965_s9, 4  ;;  %s1679_s28 = scalar_lea.hbm %s1944_s5, 32  ;;  %s1674_s11 = int_to_ptr.hbm [resolvable:$true] %s1673_s11 }
  0x6b   : > { %858 = vmatpush.bf16.msra.mxu0 %v1161_v14  ;;  %871 = vmatpush.bf16.msra.mxu1 %v1225_v16  ;;  %v1254_v14 = vld [vmem:[#allocation8 + $0x118] sm:$0xf0]  ;;  %s1675_s12 = scalar_lea.hbm %s1674_s11, 16  ;;  %p1680_p12 = scmp.lt.s32.totalorder %s1674_s11, %s1944_s5 }
  0x6c   : > { %v1257_v16 = vor.u32 %v1419_v13, %v1254_v14  ;;  %p1676_p1 = scmp.ne.s32.totalorder %s1674_s11, %s1675_s12  ;;  %p1681_p8 = scmp.lt.s32.totalorder %s1679_s28, %s1675_s12 }
  0x6d   : > { %884 = vmatpush.bf16.msra.mxu2 %v1289_v32  ;;  %897 = vmatpush.bf16.msra.mxu3 %v1353_v34  ;;  %v304_v34 = vperm.slane %v300_v24, 2 }
  0x6e   : > { %p1677_p3 = pnand %p1676_p1, %p1848_p13  ;;  %p1682_p7 = por %p1681_p8, %p1680_p12 }
  0x6f   : > { %859 = vmatpush.bf16.msra.mxu0 %v1153_v26  ;;  %872 = vmatpush.bf16.msra.mxu1 %v1217_v28  ;;  %v302_v26 = vperm.slane %v300_v24, 0 }
  0x70   : > { %p1678_p5 = pneg %p1677_p3 }
  0x71   : > { %885 = vmatpush.bf16.msra.mxu2 %v1281_v44  ;;  %898 = vmatpush.bf16.msra.mxu3 %v1345_v46 }
  0x72   : > { %p1683_p9 = pnand %p1682_p7, %p1678_p5 }
  0x73   : > { %860 = vmatpush.bf16.msra.mxu0 %v1145_v37  ;;  %873 = vmatpush.bf16.msra.mxu1 %v1209_v40 }
  0x75   : > { %886 = vmatpush.bf16.msra.mxu2 %v1273_v56  ;;  %899 = vmatpush.bf16.msra.mxu3 %v1337_v58 }
  0x77   : > { %861 = vmatpush.bf16.msra.mxu0 %v1137_v50  ;;  %874 = vmatpush.bf16.msra.mxu1 %v1201_v52  ;;  %v478_v50 = vld [vmem:[%s1943_s4] sm:$0x3] }
  0x78   : > { %v480_v53 = vperm.slane %v478_v50, 0  ;;  %v481_v1 = vperm.slane %v478_v50, 1 }
  0x79   : > { %887 = vmatpush.bf16.msra.mxu2 %v1265_v3  ;;  %900 = vmatpush.bf16.msra.mxu3 %v1329_v7 }
  0x7b   : > { %862 = vmatpush.bf16.msra.mxu0 %v1129_v62  ;;  %875 = vmatpush.bf16.msra.mxu1 %v1193_v2 }
  0x7d   : > { %888 = vmatpush.bf16.msra.mxu2 %v1257_v16  ;;  %901 = vmatpush.bf16.msra.mxu3 %v1321_v18 }
  0x7f   : > { %863 = vmatpush.bf16.msra.mxu0 %v1121_v11  ;;  %876 = vmatpush.bf16.msra.mxu1 %v1185_v12 }
  0x81   : > { %889 = vmatpush.bf16.msra.mxu2 %v1249_v22  ;;  %902 = vmatpush.bf16.msra.mxu3 %v1313_v25 }
  0xbf   : > { %v363_v28 = vpop.f32.mrf.mxu0  ;;  %v376_v30 = vpop.f32.mrf.mxu1 }
  0xc0   : > { %v364_v29 = vadd.f32 %v363_v28, %v302_v26  ;;  %v377_v31 = vadd.f32 %v376_v30, %v303_v27 }
  0xc2   : > { %v406_v32 = vmax.f32 %v364_v29, 0.0  ;;  %v407_v33 = vmax.f32 %v377_v31, 0.0 }
  0xc4   : > { %v410_v35 = vpack.c.bf16 %v406_v32, %v406_v32  ;;  %v411_v37 = vpack.c.bf16 %v407_v33, %v407_v33 }
  0xc6   : > { %812 = vmatmul.bf16.vlgmr.msrb.gmra.mxu0 %v410_v35  ;;  %825 = vmatmul.bf16.vlgmr.msrb.gmra.mxu1 %v411_v37 }
  0xc7   : > { %v389_v38 = vpop.f32.mrf.mxu2  ;;  %v402_v40 = vpop.f32.mrf.mxu3 }
  0xc8   : > { %v390_v39 = vadd.f32 %v389_v38, %v304_v34  ;;  %v365_v41 = vpop.f32.mrf.mxu0  ;;  %v403_v42 = vadd.f32 %v402_v40, %v305_v36  ;;  %v378_v43 = vpop.f32.mrf.mxu1 }
  0xca   : > { %v408_v44 = vmax.f32 %v390_v39, 0.0  ;;  %v409_v45 = vmax.f32 %v403_v42, 0.0 }
  0xcc   : > { %v412_v46 = vpack.c.bf16 %v408_v44, %v408_v44  ;;  %v413_v47 = vpack.c.bf16 %v409_v45, %v409_v45 }
  0xce   : > { %838 = vmatmul.bf16.vlgmr.msrb.gmra.mxu2 %v412_v46  ;;  %851 = vmatmul.bf16.vlgmr.msrb.gmra.mxu3 %v413_v47 }
  0xcf   : > { %v391_v48 = vpop.f32.mrf.mxu2  ;;  %v404_v49 = vpop.f32.mrf.mxu3 }
  0xd6   : > { %864 = vmatmul.bf16.vlgmr.msra.gmra.mxu0 %v410_v35  ;;  %877 = vmatmul.bf16.vlgmr.msra.gmra.mxu1 %v411_v37 }
  0xde   : > { %890 = vmatmul.bf16.vlgmr.msra.gmra.mxu2 %v412_v46  ;;  %903 = vmatmul.bf16.vlgmr.msra.gmra.mxu3 %v413_v47 }
 0x143   : > { %v813_v51 = vpop.f32.mrf.mxu0  ;;  %v826_v52 = vpop.f32.mrf.mxu1 }
 0x144   : > { %v814_v54 = vadd.f32 %v813_v51, %v480_v53 }
 0x146   : > { %v827_v57 = vadd.f32 %v826_v52, %v814_v54 }
 0x14b   : > { %v815_v55 = vpop.f32.mrf.mxu0  ;;  %v828_v56 = vpop.f32.mrf.mxu1 }
 0x151   : > { %v839_v58 = vpop.f32.mrf.mxu2  ;;  %v852_v60 = vpop.f32.mrf.mxu3 }
 0x152   : > { %v840_v59 = vadd.f32 %v839_v58, %v827_v57 }
 0x153   : > { %v865_v62 = vpop.f32.mrf.mxu0  ;;  %v878_v63 = vpop.f32.mrf.mxu1 }
 0x154   : > { %v853_v61 = vadd.f32 %v852_v60, %v840_v59  ;;  %v866_v4 = vadd.f32 %v865_v62, %v481_v1 }
 0x156   : > { %v1370_v0 = vmul.f32 -1.442695, %v853_v61  ;;  %v879_v9 = vadd.f32 %v878_v63, %v866_v4 }
 0x158   : > { %1531 = vpow2.f32 %v1370_v0 }
 0x159   : > { %v841_v2 = vpop.f32.mrf.mxu2  ;;  %v854_v3 = vpop.f32.mrf.mxu3 }
 0x15b   : > { %v867_v5 = vpop.f32.mrf.mxu0  ;;  %v880_v6 = vpop.f32.mrf.mxu1 }
 0x15e   : > { %v1532_v7 = vpop.eup %1531 }
 0x15f   : > { %v914_v8 = vadd.f32 1.0, %v1532_v7 }
 0x161   : > { %1533 = vrcp.f32 %v914_v8  ;;  %v891_v10 = vpop.f32.mrf.mxu2  ;;  %v904_v12 = vpop.f32.mrf.mxu3  ;;  %v927_v20 = vand.u32 2147483648, %v914_v8  ;;  %v925_v22 = vand.u32 2147483647, %v914_v8  ;;  %vm921_vm2 = vweird.f32 %v914_v8 }
 0x162   : > { %v892_v11 = vadd.f32 %v891_v10, %v879_v9 }
 0x163   : > { %v928_v26 = vor.u32 1.1754944e-38, %v927_v20  ;;  %vm926_vm4 = vcmp.eq.f32.partialorder %v925_v22, 8.507059e+37 }
 0x164   : > { %v905_v13 = vadd.f32 %v904_v12, %v892_v11 }
 0x166   : > { %v1371_v14 = vmul.f32 -1.442695, %v905_v13 }
 0x167   : > { %v1534_v15 = vpop.eup %1533 }
 0x168   : > { %v917_v16 = vmul.f32 %v1534_v15, %v914_v8  ;;  %1535 = vpow2.f32 %v1371_v14  ;;  %vm922_vm1 = vweird.f32 %v1534_v15 }
 0x169   : > { %v893_v17 = vpop.f32.mrf.mxu2  ;;  %v906_v19 = vpop.f32.mrf.mxu3  ;;  %vm923_vm3 = vmor %vm921_vm2, %vm922_vm1 }
 0x16a   : > { %v918_v18 = vsub.f32 1.0, %v917_v16 }
 0x16c   : > { %v919_v21 = vmul.f32 %v1534_v15, %v918_v18 }
 0x16e   : > { %v1536_v23 = vpop.eup %1535  ;;  %v920_v24 = vadd.f32 %v1534_v15, %v919_v21 }
 0x16f   : > { %v915_v25 = vadd.f32 1.0, %v1536_v23 }
 0x170   : > { %v924_v27 = vsel %vm923_vm3, %v1534_v15, %v920_v24 }
 0x171   : > { %1537 = vrcp.f32 %v915_v25  ;;  %v929_v28 = vsel %vm926_vm4, %v928_v26, %v924_v27  ;;  %v942_v32 = vand.u32 2147483648, %v915_v25  ;;  %v940_v34 = vand.u32 2147483647, %v915_v25 }
 0x172   : > { %946 = vst [vmem:[%s289_s16] sm:$0xff] %v929_v28  ;;  %vm936_vm6 = vweird.f32 %v915_v25 }
 0x173   : > { %v943_v36 = vor.u32 1.1754944e-38, %v942_v32  ;;  %vm941_vm8 = vcmp.eq.f32.partialorder %v940_v34, 8.507059e+37 }
 0x177   : > { %v1538_v29 = vpop.eup %1537 }
 0x178   : > { %v932_v30 = vmul.f32 %v1538_v29, %v915_v25  ;;  %vm937_vm5 = vweird.f32 %v1538_v29 }
 0x179   : > { %vm938_vm7 = vmor %vm936_vm6, %vm937_vm5 }
 0x17a   : > { %v933_v31 = vsub.f32 1.0, %v932_v30 }
 0x17c   : > { %v934_v33 = vmul.f32 %v1538_v29, %v933_v31 }
 0x17e   : > { %v935_v35 = vadd.f32 %v1538_v29, %v934_v33 }
 0x180   : > { %v939_v37 = vsel %vm938_vm7, %v1538_v29, %v935_v35 }
 0x181   : > { %v944_v38 = vsel %vm941_vm8, %v943_v36, %v939_v37 }
 0x182   : > { %947 = vst [vmem:[%s289_s16 + $0x8] sm:$0xff] %v944_v38 }
 0x183   : > { %1686 = shalt.err (!%p1683_p9)
}
 0x184   : > { %1464 = dma.vmem_to_hbm [thread:$0]  (%p1848_p13), %s963_s10, 256, %s965_s9, %s949_s25  }
 0x185 PF: > { %s976_s7 = sand.u32 1, %s1721_s18   ;;  %p1951_p10 = scmp.ge.s32.totalorder %s1733_s21, 2 }
 0x186   : > { %s977_s14 = scalar_lea.sflag [#allocation4], %s976_s7 }
 0x187   : > { %p1481_p11 = pnand %p1951_p10, %p1853_p4 }
 0x189   : > { %p1482_p0 = pneg %p1481_p11 }
 0x18b   : > { %1716 = dma.done.wait (%p1482_p0), %s977_s14, 256  }
 0x18c   : > { %1718 = vsyncadd (%p1482_p0), %s977_s14, 4294967040  ;;  %p20_p2 = scmp.ge.s32.totalorder %s1828_s24, 4   ;;  %s1952_s18 = smov %s1725_s19 }
 0x18d   : > { %s1953_s19 = smov %s1729_s20  ;;  %s1954_s20 = smov %s1840_s29 }
 0x18e   : > { %s1955_s21 = smov %s1828_s24  ;;  %22 = sbr.rel (!%p20_p2) target bundleno = 7 (0x7), region = 97 }
 0x193   :  { %983 = vsyncpa [#allocation3], 1 }
 0x194   :  { %985 = vsyncpa [#allocation3 + $0x1], 1 }
 0x195   :  { %986 = vsyncpa [#allocation6], 1 }
 0x196   :  { %987 = vsyncpa [#allocation9], 1 }
 0x197   :  { %988 = vsyncpa [#allocation4], 1 }
 0x198   :  { %990 = vsyncpa [#allocation4 + $0x1], 1 }

</bundles_post_ra>
